<compile_context>
chip_gen: v7x
topology: tpu7x:2x2x1
jax: 0.10.0
libtpu: 0.0.40
codegen_flags: <defaults>
</compile_context>

<pallas_src>
import jax
import jax.numpy as jnp
from jax.experimental import pallas as pl
from jax.experimental.pallas import tpu as pltpu


def _conv1x1_kernel(w_ref, x_ref, o_ref):
    # w_ref: (C_out, C_in) bf16, x_ref: (C_in, M) f32, o_ref: (C_out, M) f32
    # Cast activations to bf16 in-kernel -> single-pass bf16 MXU matmul,
    # accumulate in f32, emit f32.
    x_bf16 = x_ref[...].astype(jnp.bfloat16)
    o_ref[...] = jnp.dot(
        w_ref[...], x_bf16, preferred_element_type=jnp.float32
    ).astype(o_ref.dtype)
    # TODO(synk): if this conv is part of an MBConv block, fuse the following
    # BatchNorm scale/shift + activation + residual add here (free VPU filler)
    # instead of separate XLA ops; this standalone module has none to fuse.


def conv2d_1x1(x_nchw, w2d):
    """1x1 conv, stride 1, no bias.

    x_nchw: (N, C_in, H, W) float32; w2d: (C_out, C_in) bf16 (pre-laid-out).
    Returns (N, C_out, H, W) float32.
    """
    N, C_in, H, W = x_nchw.shape
    C_out = w2d.shape[0]
    HW = H * W

    # NCHW -> (N, C_in, H*W): pure (free) reshape, no transpose ever.
    x3d = x_nchw.reshape(N, C_in, HW)

    cost = pl.CostEstimate(
        flops=2 * C_out * C_in * N * HW,
        transcendentals=0,
        bytes_accessed=(
            w2d.dtype.itemsize * C_out * C_in
            + x_nchw.dtype.itemsize * C_in * N * HW
            + 4 * C_out * N * HW
        ),
    )

    if N == 1:
        # No grid: whole operands resident in VMEM (total footprint << 1 MiB),
        # far below default scoped VMEM on v5e/v6e/v7x. Spatial axis (196) is
        # the lane axis of the output.
        out2d = pl.pallas_call(
            _conv1x1_kernel,
            out_shape=jax.ShapeDtypeStruct((C_out, HW), x_nchw.dtype),
            in_specs=[
                pl.BlockSpec(memory_space=pltpu.MemorySpace.VMEM),
                pl.BlockSpec(memory_space=pltpu.MemorySpace.VMEM),
            ],
            out_specs=pl.BlockSpec(memory_space=pltpu.MemorySpace.VMEM),
            cost_estimate=cost,
        )(w2d, x3d[0])
        return out2d.reshape(1, C_out, H, W)

    # N > 1: grid over the batch, NCHW-native blocks (batch dim squeezed),
    # no wrapper transposes -> no extra HBM read+write of X or the output.
    out3d = pl.pallas_call(
        _conv1x1_kernel,
        out_shape=jax.ShapeDtypeStruct((N, C_out, HW), x_nchw.dtype),
        grid=(N,),
        in_specs=[
            pl.BlockSpec((C_out, C_in), lambda n: (0, 0)),
            pl.BlockSpec((None, C_in, HW), lambda n: (n, 0, 0)),
        ],
        out_specs=pl.BlockSpec((None, C_out, HW), lambda n: (n, 0, 0)),
        compiler_params=pltpu.CompilerParams(
            dimension_semantics=("parallel",)
        ),
        cost_estimate=cost,
    )(w2d, x3d)
    return out3d.reshape(N, C_out, H, W)


class M:
    """JAX mirror of the PyTorch module: Conv2d(672, 112, 1x1, bias=False)."""

    def __init__(self, key):
        c_out, c_in = 112, 672
        # Deterministic kaiming-uniform-like init (matches torch Conv2d default scale).
        fan_in = c_in * 1 * 1
        bound = (1.0 / fan_in) ** 0.5 * (3.0 ** 0.5)
        self.weight = jax.random.uniform(
            key, (c_out, c_in, 1, 1), dtype=jnp.float32, minval=-bound, maxval=bound
        )
        # Hoisted, pre-laid-out bf16 weight for the kernel (done once, not per call):
        # (C_out, C_in, 1, 1) -> (C_out, C_in), bf16 halves the weight HBM traffic.
        self.w2d = self.weight.reshape(c_out, c_in).astype(jnp.bfloat16)

    def __call__(self, x216):
        x217 = conv2d_1x1(x216, self.w2d)
        return x217


if __name__ == "__main__":
    key = jax.random.PRNGKey(0)
    k_in, k_w, k_in2 = jax.random.split(key, 3)

    model = M(k_w)
    w_ref2d = model.weight.reshape(112, 672)

    # Input shape implied by the module: (1, 672, 14, 14), NCHW.
    x216 = jax.random.normal(k_in, (1, 672, 14, 14), dtype=jnp.float32)
    out = model(x216)
    out = jax.block_until_ready(out)
    assert out.shape == (1, 112, 14, 14), out.shape

    # Sanity check vs plain-JAX f32 reference (bf16 operands -> loosened tol).
    ref = jnp.einsum("nchw,oc->nohw", x216, w_ref2d)
    assert jnp.allclose(out, ref, atol=3e-2, rtol=3e-2)

    # Exercise the N>1 grid path (NCHW-native blocks, no wrapper transposes).
    x_b2 = jax.random.normal(k_in2, (2, 672, 14, 14), dtype=jnp.float32)
    out_b2 = jax.block_until_ready(model(x_b2))
    assert out_b2.shape == (2, 112, 14, 14), out_b2.shape
    ref_b2 = jnp.einsum("nchw,oc->nohw", x_b2, w_ref2d)
    assert jnp.allclose(out_b2, ref_b2, atol=3e-2, rtol=3e-2)

    print("KERNEL_OK")
</pallas_src>

<mosaic_0001>
module attributes {stable_mosaic.version = 11 : i64} {
  func.func @_conv1x1_kernel(%arg0: memref<112x672xbf16, #tpu.memory_space<vmem>>, %arg1: memref<672x196xf32, #tpu.memory_space<vmem>>, %arg2: memref<112x196xf32, #tpu.memory_space<vmem>>) attributes {dimension_semantics = [], scalar_prefetch = 0 : i64, scratch_operands = 0 : i64, tpu.core_type = #tpu.core_type<tc>} {
    %c0 = arith.constant 0 : index
    %c0_0 = arith.constant 0 : index
    %0 = vector.load %arg1[%c0, %c0_0] : memref<672x196xf32, #tpu.memory_space<vmem>>, vector<672x196xf32>
    %1 = arith.truncf %0 : vector<672x196xf32> to vector<672x196xbf16>
    %c0_1 = arith.constant 0 : index
    %c0_2 = arith.constant 0 : index
    %2 = vector.load %arg0[%c0_1, %c0_2] : memref<112x672xbf16, #tpu.memory_space<vmem>>, vector<112x672xbf16>
    %cst = arith.constant dense<0.000000e+00> : vector<112x196xf32>
    %3 = tpu.matmul %2, %1, %cst {dimension_numbers = #tpu.dot_dimension_numbers<[1], [0], [0], [1], [0, 0, 1, 1], [], []>} : vector<112x672xbf16>, vector<672x196xbf16>, vector<112x196xf32> -> vector<112x196xf32>
    %c0_3 = arith.constant 0 : index
    %c0_4 = arith.constant 0 : index
    %4 = vector.load %arg2[%c0_3, %c0_4] : memref<112x196xf32, #tpu.memory_space<vmem>>, vector<112x196xf32>
    tpu.vector_store %arg2[%c0_3, %c0_4], %3 {strides = array<i32>} : memref<112x196xf32, #tpu.memory_space<vmem>>, vector<112x196xf32>,
    return
  }
}

</mosaic_0001>

<bundles_post_ra>
// kernel: tpu_custom_call.1
= control target key start
LH: loop header
LB: loop body
LE: loop exit
PB: predicated region body
PF: predicated region fallthrough
CT: control target
= control target key end

     0   :  { %vm509_vm0 = vcmask 261120   ;;  %vm841_vm1 = vcmask 556032   ;;  %s1859_s1 = inlined_call_operand.vmem [shape: f32[672,196], index: 1, kind: input, shape index: {}]   ;;  %s1860_s0 = inlined_call_operand.vmem [shape: bf16[112,672], index: 0, kind: input, shape index: {}]   ;;  %s1861_s2 = inlined_call_operand.vmem [shape: f32[112,196], index: 2, kind: output, shape index: {}]  }
   0x1   :  { %v13_v0 = vld [vmem:[%s1859_s1 + $0x8] sm:$0xff]  ;;  %v15_v1 = vld [vmem:[%s1859_s1 + $0x18] sm:$0xff]  ;;  %v12_v5 = vld [vmem:[%s1859_s1] sm:$0xff] }
   0x2   :  { %v77_v2 = vld [vmem:[%s1859_s1 + $0x208] sm:$0xff]  ;;  %v181_v3 = vpack.c.bf16 %v15_v1, %v13_v0  ;;  %v79_v4 = vld [vmem:[%s1859_s1 + $0x218] sm:$0xff]  ;;  %v14_v6 = vld [vmem:[%s1859_s1 + $0x10] sm:$0xff] }
   0x3   :  { %v213_v7 = vpack.c.bf16 %v79_v4, %v77_v2  ;;  %v180_v8 = vpack.c.bf16 %v14_v6, %v12_v5  ;;  %v76_v9 = vld [vmem:[%s1859_s1 + $0x200] sm:$0xff]  ;;  %v78_v10 = vld [vmem:[%s1859_s1 + $0x210] sm:$0xff]  ;;  %v17_v11 = vld [vmem:[%s1859_s1 + $0x28] sm:$0xff] }
   0x4   :  { %531 = vmatprep.subr.bf16.mxu1 %v181_v3  ;;  %v212_v12 = vpack.c.bf16 %v78_v10, %v76_v9  ;;  %v19_v13 = vld [vmem:[%s1859_s1 + $0x38] sm:$0xff]  ;;  %v81_v14 = vld [vmem:[%s1859_s1 + $0x228] sm:$0xff]  ;;  %v16_v18 = vld [vmem:[%s1859_s1 + $0x20] sm:$0xff] }
   0x5   :  { %v83_v15 = vld [vmem:[%s1859_s1 + $0x238] sm:$0xff]  ;;  %634 = vmatprep.subr.bf16.mxu0 %v213_v7  ;;  %532 = vmatpush1.bf16.msra.mxu1 %v180_v8  ;;  %v183_v16 = vpack.c.bf16 %v19_v13, %v17_v11  ;;  %v18_v19 = vld [vmem:[%s1859_s1 + $0x30] sm:$0xff]  ;;  %v80_v20 = vld [vmem:[%s1859_s1 + $0x220] sm:$0xff] }
   0x6   :  { %v215_v17 = vpack.c.bf16 %v83_v15, %v81_v14  ;;  %635 = vmatpush1.bf16.msra.mxu0 %v212_v12  ;;  %v182_v21 = vpack.c.bf16 %v18_v19, %v16_v18  ;;  %v82_v22 = vld [vmem:[%s1859_s1 + $0x230] sm:$0xff]  ;;  %v21_v23 = vld [vmem:[%s1859_s1 + $0x48] sm:$0xff]  ;;  %v23_v24 = vld [vmem:[%s1859_s1 + $0x58] sm:$0xff] }
   0x7   :  { %533 = vmatprep.subr.bf16.mxu1 %v183_v16  ;;  %v214_v25 = vpack.c.bf16 %v82_v22, %v80_v20  ;;  %v185_v26 = vpack.c.bf16 %v23_v24, %v21_v23  ;;  %v85_v27 = vld [vmem:[%s1859_s1 + $0x248] sm:$0xff]  ;;  %v87_v28 = vld [vmem:[%s1859_s1 + $0x258] sm:$0xff]  ;;  %v20_v29 = vld [vmem:[%s1859_s1 + $0x40] sm:$0xff] }
   0x8   :  { %636 = vmatprep.subr.bf16.mxu0 %v215_v17  ;;  %v217_v30 = vpack.c.bf16 %v87_v28, %v85_v27  ;;  %v22_v31 = vld [vmem:[%s1859_s1 + $0x50] sm:$0xff]  ;;  %v84_v32 = vld [vmem:[%s1859_s1 + $0x240] sm:$0xff]  ;;  %v25_v35 = vld [vmem:[%s1859_s1 + $0x68] sm:$0xff] }
   0x9   :  { %v86_v33 = vld [vmem:[%s1859_s1 + $0x250] sm:$0xff]  ;;  %534 = vmatpush1.bf16.msra.mxu1 %v182_v21  ;;  %v184_v34 = vpack.c.bf16 %v22_v31, %v20_v29  ;;  %v27_v36 = vld [vmem:[%s1859_s1 + $0x78] sm:$0xff]  ;;  %v89_v37 = vld [vmem:[%s1859_s1 + $0x268] sm:$0xff] }
   0xa   :  { %637 = vmatpush1.bf16.msra.mxu0 %v214_v25  ;;  %535 = vmatprep.subr.bf16.mxu1 %v185_v26  ;;  %v216_v38 = vpack.c.bf16 %v86_v33, %v84_v32  ;;  %v187_v39 = vpack.c.bf16 %v27_v36, %v25_v35  ;;  %v91_v40 = vld [vmem:[%s1859_s1 + $0x278] sm:$0xff]  ;;  %v24_v41 = vld [vmem:[%s1859_s1 + $0x60] sm:$0xff]  ;;  %v26_v42 = vld [vmem:[%s1859_s1 + $0x70] sm:$0xff] }
   0xb   :  { %638 = vmatprep.subr.bf16.mxu0 %v217_v30  ;;  %v219_v43 = vpack.c.bf16 %v91_v40, %v89_v37  ;;  %v88_v44 = vld [vmem:[%s1859_s1 + $0x260] sm:$0xff]  ;;  %v90_v45 = vld [vmem:[%s1859_s1 + $0x270] sm:$0xff]  ;;  %v29_v46 = vld [vmem:[%s1859_s1 + $0x88] sm:$0xff]  ;;  %v186_v50 = vpack.c.bf16 %v26_v42, %v24_v41 }
   0xc   :  { %v31_v47 = vld [vmem:[%s1859_s1 + $0x98] sm:$0xff]  ;;  %v93_v48 = vld [vmem:[%s1859_s1 + $0x288] sm:$0xff]  ;;  %v218_v51 = vpack.c.bf16 %v90_v45, %v88_v44  ;;  %v28_v53 = vld [vmem:[%s1859_s1 + $0x80] sm:$0xff] }
   0xd   :  { %v95_v49 = vld [vmem:[%s1859_s1 + $0x298] sm:$0xff]  ;;  %536 = vmatpush1.bf16.msra.mxu1 %v184_v34  ;;  %v189_v52 = vpack.c.bf16 %v31_v47, %v29_v46  ;;  %v30_v54 = vld [vmem:[%s1859_s1 + $0x90] sm:$0xff]  ;;  %v92_v55 = vld [vmem:[%s1859_s1 + $0x280] sm:$0xff] }
   0xe   :  { %639 = vmatpush1.bf16.msra.mxu0 %v216_v38  ;;  %537 = vmatprep.subr.bf16.mxu1 %v187_v39  ;;  %v221_v56 = vpack.c.bf16 %v95_v49, %v93_v48  ;;  %v94_v57 = vld [vmem:[%s1859_s1 + $0x290] sm:$0xff]  ;;  %v33_v58 = vld [vmem:[%s1859_s1 + $0xa8] sm:$0xff]  ;;  %v35_v59 = vld [vmem:[%s1859_s1 + $0xb8] sm:$0xff]  ;;  %v188_v62 = vpack.c.bf16 %v30_v54, %v28_v53 }
   0xf   :  { %640 = vmatprep.subr.bf16.mxu0 %v219_v43  ;;  %v97_v60 = vld [vmem:[%s1859_s1 + $0x2a8] sm:$0xff]  ;;  %v99_v61 = vld [vmem:[%s1859_s1 + $0x2b8] sm:$0xff]  ;;  %v220_v63 = vpack.c.bf16 %v94_v57, %v92_v55  ;;  %v191_v0 = vpack.c.bf16 %v35_v59, %v33_v58  ;;  %v32_v1 = vld [vmem:[%s1859_s1 + $0xa0] sm:$0xff] }
  0x10   :  { %v34_v2 = vld [vmem:[%s1859_s1 + $0xb0] sm:$0xff]  ;;  %v96_v3 = vld [vmem:[%s1859_s1 + $0x2a0] sm:$0xff]  ;;  %v223_v4 = vpack.c.bf16 %v99_v61, %v97_v60  ;;  %v37_v6 = vld [vmem:[%s1859_s1 + $0xc8] sm:$0xff] }
  0x11   :  { %538 = vmatpush1.bf16.msra.mxu1 %v186_v50  ;;  %v98_v5 = vld [vmem:[%s1859_s1 + $0x2b0] sm:$0xff]  ;;  %v39_v7 = vld [vmem:[%s1859_s1 + $0xd8] sm:$0xff]  ;;  %v101_v8 = vld [vmem:[%s1859_s1 + $0x2c8] sm:$0xff]  ;;  %v190_v10 = vpack.c.bf16 %v34_v2, %v32_v1 }
  0x12   :  { %641 = vmatpush1.bf16.msra.mxu0 %v218_v51  ;;  %539 = vmatprep.subr.bf16.mxu1 %v189_v52  ;;  %v103_v9 = vld [vmem:[%s1859_s1 + $0x2d8] sm:$0xff]  ;;  %v222_v11 = vpack.c.bf16 %v98_v5, %v96_v3  ;;  %v193_v12 = vpack.c.bf16 %v39_v7, %v37_v6  ;;  %v36_v13 = vld [vmem:[%s1859_s1 + $0xc0] sm:$0xff]  ;;  %v38_v14 = vld [vmem:[%s1859_s1 + $0xd0] sm:$0xff] }
  0x13   :  { %642 = vmatprep.subr.bf16.mxu0 %v221_v56  ;;  %v100_v15 = vld [vmem:[%s1859_s1 + $0x2c0] sm:$0xff]  ;;  %v225_v16 = vpack.c.bf16 %v103_v9, %v101_v8  ;;  %v102_v17 = vld [vmem:[%s1859_s1 + $0x2d0] sm:$0xff]  ;;  %v41_v18 = vld [vmem:[%s1859_s1 + $0xe8] sm:$0xff]  ;;  %v192_v22 = vpack.c.bf16 %v38_v14, %v36_v13 }
  0x14   :  { %v43_v19 = vld [vmem:[%s1859_s1 + $0xf8] sm:$0xff]  ;;  %v105_v20 = vld [vmem:[%s1859_s1 + $0x2e8] sm:$0xff]  ;;  %v224_v23 = vpack.c.bf16 %v102_v17, %v100_v15  ;;  %v40_v25 = vld [vmem:[%s1859_s1 + $0xe0] sm:$0xff] }
  0x15   :  { %540 = vmatpush1.bf16.msra.mxu1 %v188_v62  ;;  %v107_v21 = vld [vmem:[%s1859_s1 + $0x2f8] sm:$0xff]  ;;  %v195_v24 = vpack.c.bf16 %v43_v19, %v41_v18  ;;  %v42_v26 = vld [vmem:[%s1859_s1 + $0xf0] sm:$0xff]  ;;  %v104_v27 = vld [vmem:[%s1859_s1 + $0x2e0] sm:$0xff] }
  0x16   :  { %643 = vmatpush1.bf16.msra.mxu0 %v220_v63  ;;  %541 = vmatprep.subr.bf16.mxu1 %v191_v0  ;;  %v227_v28 = vpack.c.bf16 %v107_v21, %v105_v20  ;;  %v106_v29 = vld [vmem:[%s1859_s1 + $0x2f0] sm:$0xff]  ;;  %v45_v30 = vld [vmem:[%s1859_s1 + $0x108] sm:$0xff]  ;;  %v47_v31 = vld [vmem:[%s1859_s1 + $0x118] sm:$0xff]  ;;  %v194_v34 = vpack.c.bf16 %v42_v26, %v40_v25 }
  0x17   :  { %644 = vmatprep.subr.bf16.mxu0 %v223_v4  ;;  %v109_v32 = vld [vmem:[%s1859_s1 + $0x308] sm:$0xff]  ;;  %v111_v33 = vld [vmem:[%s1859_s1 + $0x318] sm:$0xff]  ;;  %v226_v35 = vpack.c.bf16 %v106_v29, %v104_v27  ;;  %v197_v36 = vpack.c.bf16 %v47_v31, %v45_v30  ;;  %v44_v37 = vld [vmem:[%s1859_s1 + $0x100] sm:$0xff] }
  0x18   :  { %v46_v38 = vld [vmem:[%s1859_s1 + $0x110] sm:$0xff]  ;;  %v108_v39 = vld [vmem:[%s1859_s1 + $0x300] sm:$0xff]  ;;  %v229_v40 = vpack.c.bf16 %v111_v33, %v109_v32  ;;  %v49_v42 = vld [vmem:[%s1859_s1 + $0x128] sm:$0xff] }
  0x19   :  { %542 = vmatpush1.bf16.msra.mxu1 %v190_v10  ;;  %v110_v41 = vld [vmem:[%s1859_s1 + $0x310] sm:$0xff]  ;;  %v51_v43 = vld [vmem:[%s1859_s1 + $0x138] sm:$0xff]  ;;  %v113_v44 = vld [vmem:[%s1859_s1 + $0x328] sm:$0xff]  ;;  %v196_v46 = vpack.c.bf16 %v46_v38, %v44_v37 }
  0x1a   :  { %645 = vmatpush1.bf16.msra.mxu0 %v222_v11  ;;  %543 = vmatprep.subr.bf16.mxu1 %v193_v12  ;;  %v115_v45 = vld [vmem:[%s1859_s1 + $0x338] sm:$0xff]  ;;  %v228_v47 = vpack.c.bf16 %v110_v41, %v108_v39  ;;  %v199_v48 = vpack.c.bf16 %v51_v43, %v49_v42  ;;  %v48_v49 = vld [vmem:[%s1859_s1 + $0x120] sm:$0xff]  ;;  %v50_v50 = vld [vmem:[%s1859_s1 + $0x130] sm:$0xff] }
  0x1b   :  { %646 = vmatprep.subr.bf16.mxu0 %v225_v16  ;;  %v112_v51 = vld [vmem:[%s1859_s1 + $0x320] sm:$0xff]  ;;  %v231_v52 = vpack.c.bf16 %v115_v45, %v113_v44  ;;  %v114_v53 = vld [vmem:[%s1859_s1 + $0x330] sm:$0xff]  ;;  %v53_v54 = vld [vmem:[%s1859_s1 + $0x148] sm:$0xff]  ;;  %v198_v58 = vpack.c.bf16 %v50_v50, %v48_v49 }
  0x1c   :  { %v55_v55 = vld [vmem:[%s1859_s1 + $0x158] sm:$0xff]  ;;  %v117_v56 = vld [vmem:[%s1859_s1 + $0x348] sm:$0xff]  ;;  %v230_v59 = vpack.c.bf16 %v114_v53, %v112_v51  ;;  %v52_v61 = vld [vmem:[%s1859_s1 + $0x140] sm:$0xff] }
  0x1d   :  { %544 = vmatpush1.bf16.msra.mxu1 %v192_v22  ;;  %v119_v57 = vld [vmem:[%s1859_s1 + $0x358] sm:$0xff]  ;;  %v201_v60 = vpack.c.bf16 %v55_v55, %v53_v54  ;;  %v54_v62 = vld [vmem:[%s1859_s1 + $0x150] sm:$0xff]  ;;  %v116_v63 = vld [vmem:[%s1859_s1 + $0x340] sm:$0xff] }
  0x1e   :  { %647 = vmatpush1.bf16.msra.mxu0 %v224_v23  ;;  %545 = vmatprep.subr.bf16.mxu1 %v195_v24  ;;  %v233_v0 = vpack.c.bf16 %v119_v57, %v117_v56  ;;  %v118_v1 = vld [vmem:[%s1859_s1 + $0x350] sm:$0xff]  ;;  %v57_v2 = vld [vmem:[%s1859_s1 + $0x168] sm:$0xff]  ;;  %v59_v3 = vld [vmem:[%s1859_s1 + $0x178] sm:$0xff]  ;;  %v200_v6 = vpack.c.bf16 %v54_v62, %v52_v61 }
  0x1f   :  { %648 = vmatprep.subr.bf16.mxu0 %v227_v28  ;;  %v121_v4 = vld [vmem:[%s1859_s1 + $0x368] sm:$0xff]  ;;  %v123_v5 = vld [vmem:[%s1859_s1 + $0x378] sm:$0xff]  ;;  %v56_v7 = vld [vmem:[%s1859_s1 + $0x160] sm:$0xff]  ;;  %v232_v10 = vpack.c.bf16 %v118_v1, %v116_v63  ;;  %v203_v11 = vpack.c.bf16 %v59_v3, %v57_v2 }
  0x20   :  { %v58_v8 = vld [vmem:[%s1859_s1 + $0x170] sm:$0xff]  ;;  %v120_v9 = vld [vmem:[%s1859_s1 + $0x360] sm:$0xff]  ;;  %v61_v13 = vld [vmem:[%s1859_s1 + $0x188] sm:$0xff]  ;;  %v235_v15 = vpack.c.bf16 %v123_v5, %v121_v4 }
  0x21   :  { %546 = vmatpush1.bf16.msra.mxu1 %v194_v34  ;;  %v122_v12 = vld [vmem:[%s1859_s1 + $0x370] sm:$0xff]  ;;  %v63_v14 = vld [vmem:[%s1859_s1 + $0x198] sm:$0xff]  ;;  %v125_v16 = vld [vmem:[%s1859_s1 + $0x388] sm:$0xff]  ;;  %v202_v20 = vpack.c.bf16 %v58_v8, %v56_v7 }
  0x22   :  { %649 = vmatpush1.bf16.msra.mxu0 %v226_v35  ;;  %547 = vmatprep.subr.bf16.mxu1 %v197_v36  ;;  %v127_v17 = vld [vmem:[%s1859_s1 + $0x398] sm:$0xff]  ;;  %v60_v18 = vld [vmem:[%s1859_s1 + $0x180] sm:$0xff]  ;;  %v62_v21 = vld [vmem:[%s1859_s1 + $0x190] sm:$0xff]  ;;  %v234_v22 = vpack.c.bf16 %v122_v12, %v120_v9  ;;  %v205_v23 = vpack.c.bf16 %v63_v14, %v61_v13 }
  0x23   :  { %650 = vmatprep.subr.bf16.mxu0 %v229_v40  ;;  %v1000_v19 = vld [vmem:[%s1860_s0 + $0x4] ss:$24 sps:$4 sm:$0xff]   ;;  %v126_v25 = vld [vmem:[%s1859_s1 + $0x390] sm:$0xff]  ;;  %v237_v27 = vpack.c.bf16 %v127_v17, %v125_v16  ;;  %v65_v28 = vld [vmem:[%s1859_s1 + $0x1a8] sm:$0xff]  ;;  %v204_v32 = vpack.c.bf16 %v62_v21, %v60_v18 }
  0x24   :  { %v124_v24 = vld [vmem:[%s1859_s1 + $0x380] sm:$0xff]  ;;  %v67_v29 = vld [vmem:[%s1859_s1 + $0x1b8] sm:$0xff]  ;;  %v129_v30 = vld [vmem:[%s1859_s1 + $0x3a8] sm:$0xff]  ;;  %563 = vmatprep.mubr.bf16.mxu1 %v1000_v19 }
  0x25   :  { %548 = vmatpush1.bf16.msra.mxu1 %v196_v46  ;;  %v1003_v26 = vld [vmem:[%s1860_s0 + $0xc] ss:$24 sps:$4 sm:$0xff]   ;;  %v131_v31 = vld [vmem:[%s1859_s1 + $0x3b8] sm:$0xff]  ;;  %v236_v33 = vpack.c.bf16 %v126_v25, %v124_v24  ;;  %v207_v34 = vpack.c.bf16 %v67_v29, %v65_v28  ;;  %v66_v36 = vld [vmem:[%s1859_s1 + $0x1b0] sm:$0xff] }
  0x26   :  { %651 = vmatpush1.bf16.msra.mxu0 %v228_v47  ;;  %549 = vmatprep.subr.bf16.mxu1 %v199_v48  ;;  %v64_v35 = vld [vmem:[%s1859_s1 + $0x1a0] sm:$0xff]  ;;  %v239_v38 = vpack.c.bf16 %v131_v31, %v129_v30  ;;  %v130_v39 = vld [vmem:[%s1859_s1 + $0x3b0] sm:$0xff]  ;;  %v69_v40 = vld [vmem:[%s1859_s1 + $0x1c8] sm:$0xff] }
  0x27   :  { %652 = vmatprep.subr.bf16.mxu0 %v231_v52  ;;  %666 = vmatprep.mubr.bf16.mxu0 %v1003_v26  ;;  %v128_v37 = vld [vmem:[%s1859_s1 + $0x3a0] sm:$0xff]  ;;  %v71_v41 = vld [vmem:[%s1859_s1 + $0x1d8] sm:$0xff]  ;;  %v133_v42 = vld [vmem:[%s1859_s1 + $0x3c8] sm:$0xff]  ;;  %v206_v45 = vpack.c.bf16 %v66_v36, %v64_v35 }
  0x28   :  { %v135_v43 = vld [vmem:[%s1859_s1 + $0x3d8] sm:$0xff]  ;;  %v68_v44 = vld [vmem:[%s1859_s1 + $0x1c0] sm:$0xff]  ;;  %v70_v46 = vld [vmem:[%s1859_s1 + $0x1d0] sm:$0xff]  ;;  %v238_v47 = vpack.c.bf16 %v130_v39, %v128_v37  ;;  %v209_v48 = vpack.c.bf16 %v71_v41, %v69_v40 }
  0x29   :  { %550 = vmatpush1.bf16.msra.mxu1 %v198_v58  ;;  %v132_v49 = vld [vmem:[%s1859_s1 + $0x3c0] sm:$0xff]  ;;  %v241_v50 = vpack.c.bf16 %v135_v43, %v133_v42  ;;  %v134_v51 = vld [vmem:[%s1859_s1 + $0x3d0] sm:$0xff]  ;;  %v73_v52 = vld [vmem:[%s1859_s1 + $0x1e8] sm:$0xff]  ;;  %v208_v57 = vpack.c.bf16 %v70_v46, %v68_v44 }
  0x2a   :  { %653 = vmatpush1.bf16.msra.mxu0 %v230_v59  ;;  %551 = vmatprep.subr.bf16.mxu1 %v201_v60  ;;  %v75_v53 = vld [vmem:[%s1859_s1 + $0x1f8] sm:$0xff]  ;;  %v137_v54 = vld [vmem:[%s1859_s1 + $0x3e8] sm:$0xff]  ;;  %v72_v56 = vld [vmem:[%s1859_s1 + $0x1e0] sm:$0xff]  ;;  %v240_v59 = vpack.c.bf16 %v134_v51, %v132_v49 }
  0x2b   :  { %654 = vmatprep.subr.bf16.mxu0 %v233_v0  ;;  %v139_v55 = vld [vmem:[%s1859_s1 + $0x3f8] sm:$0xff]  ;;  %v74_v58 = vld [vmem:[%s1859_s1 + $0x1f0] sm:$0xff]  ;;  %v211_v60 = vpack.c.bf16 %v75_v53, %v73_v52  ;;  %v136_v61 = vld [vmem:[%s1859_s1 + $0x3e0] sm:$0xff] }
  0x2c   :  { %v243_v62 = vpack.c.bf16 %v139_v55, %v137_v54  ;;  %v138_v63 = vld [vmem:[%s1859_s1 + $0x3f0] sm:$0xff]  ;;  %v141_v0 = vld [vmem:[%s1859_s1 + $0x408] sm:$0xff]  ;;  %v143_v1 = vld [vmem:[%s1859_s1 + $0x418] sm:$0xff]  ;;  %v210_v2 = vpack.c.bf16 %v74_v58, %v72_v56 }
  0x2d   :  { %552 = vmatpush1.bf16.msra.mxu1 %v200_v6  ;;  %v242_v3 = vpack.c.bf16 %v138_v63, %v136_v61  ;;  %v245_v4 = vpack.c.bf16 %v143_v1, %v141_v0  ;;  %v140_v5 = vld [vmem:[%s1859_s1 + $0x400] sm:$0xff]  ;;  %v142_v6 = vld [vmem:[%s1859_s1 + $0x410] sm:$0xff]  ;;  %v145_v8 = vld [vmem:[%s1859_s1 + $0x428] sm:$0xff] }
  0x2e   :  { %655 = vmatpush1.bf16.msra.mxu0 %v232_v10  ;;  %553 = vmatprep.subr.bf16.mxu1 %v203_v11  ;;  %v998_v7 = vld [vmem:[%s1860_s0] ss:$24 sps:$4 sm:$0xff]   ;;  %v1004_v11 = vld [vmem:[%s1860_s0 + $0x34] ss:$24 sps:$4 sm:$0xff]   ;;  %v244_v13 = vpack.c.bf16 %v142_v6, %v140_v5  ;;  %v1020_v55 = vld [vmem:[%s1860_s0 + $0x90] ss:$24 sps:$4 sm:$0xff]  }
  0x2f   :  { %656 = vmatprep.subr.bf16.mxu0 %v235_v15  ;;  %v147_v9 = vld [vmem:[%s1859_s1 + $0x438] sm:$0xff]  ;;  %v1001_v10 = vld [vmem:[%s1860_s0 + $0x8] ss:$24 sps:$4 sm:$0xff]   ;;  %v146_v16 = vld [vmem:[%s1859_s1 + $0x430] sm:$0xff] }
  0x30   :  { %v1006_v12 = vld [vmem:[%s1860_s0 + $0x3c] ss:$24 sps:$4 sm:$0xff]   ;;  %v144_v14 = vld [vmem:[%s1859_s1 + $0x420] sm:$0xff]  ;;  %v247_v15 = vpack.c.bf16 %v147_v9, %v145_v8  ;;  %v149_v17 = vld [vmem:[%s1859_s1 + $0x448] sm:$0xff] }
  0x31   :  { %554 = vmatpush1.bf16.msra.mxu1 %v202_v20  ;;  %v151_v18 = vld [vmem:[%s1859_s1 + $0x458] sm:$0xff]  ;;  %v246_v19 = vpack.c.bf16 %v146_v16, %v144_v14  ;;  %v1008_v20 = vld [vmem:[%s1860_s0 + $0x30] ss:$24 sps:$4 sm:$0xff]   ;;  %v148_v21 = vld [vmem:[%s1859_s1 + $0x440] sm:$0xff] }
  0x32   :  { %657 = vmatpush1.bf16.msra.mxu0 %v234_v22  ;;  %555 = vmatprep.subr.bf16.mxu1 %v205_v23  ;;  %v249_v22 = vpack.c.bf16 %v151_v18, %v149_v17  ;;  %v150_v23 = vld [vmem:[%s1859_s1 + $0x450] sm:$0xff]  ;;  %v153_v24 = vld [vmem:[%s1859_s1 + $0x468] sm:$0xff]  ;;  %v155_v25 = vld [vmem:[%s1859_s1 + $0x478] sm:$0xff] }
  0x33   :  { %658 = vmatprep.subr.bf16.mxu0 %v237_v27  ;;  %v1009_v26 = vld [vmem:[%s1860_s0 + $0x38] ss:$24 sps:$4 sm:$0xff]   ;;  %v1010_v27 = vld [vmem:[%s1860_s0 + $0x64] ss:$24 sps:$4 sm:$0xff]   ;;  %v248_v28 = vpack.c.bf16 %v150_v23, %v148_v21  ;;  %v251_v30 = vpack.c.bf16 %v155_v25, %v153_v24  ;;  %v1015_v40 = vld [vmem:[%s1860_s0 + $0x68] ss:$24 sps:$4 sm:$0xff]  }
  0x34   :  { %v1012_v29 = vld [vmem:[%s1860_s0 + $0x6c] ss:$24 sps:$4 sm:$0xff]   ;;  %v1014_v35 = vld [vmem:[%s1860_s0 + $0x60] ss:$24 sps:$4 sm:$0xff]   ;;  %v158_v39 = vld [vmem:[%s1859_s1 + $0x490] sm:$0xff] }
  0x35   :  { %556 = vmatpush1.bf16.msra.mxu1 %v204_v32  ;;  %v152_v31 = vld [vmem:[%s1859_s1 + $0x460] sm:$0xff]  ;;  %v154_v32 = vld [vmem:[%s1859_s1 + $0x470] sm:$0xff]  ;;  %v161_v41 = vld [vmem:[%s1859_s1 + $0x4a8] sm:$0xff] }
  0x36   :  { %659 = vmatpush1.bf16.msra.mxu0 %v236_v33  ;;  %557 = vmatprep.subr.bf16.mxu1 %v207_v34  ;;  %v157_v33 = vld [vmem:[%s1859_s1 + $0x488] sm:$0xff]  ;;  %v159_v34 = vld [vmem:[%s1859_s1 + $0x498] sm:$0xff]  ;;  %v250_v36 = vpack.c.bf16 %v154_v32, %v152_v31  ;;  %v156_v37 = vld [vmem:[%s1859_s1 + $0x480] sm:$0xff] }
  0x37   :  { %660 = vmatprep.subr.bf16.mxu0 %v239_v38  ;;  %v253_v38 = vpack.c.bf16 %v159_v34, %v157_v33  ;;  %v163_v42 = vld [vmem:[%s1859_s1 + $0x4b8] sm:$0xff]  ;;  %v1016_v43 = vld [vmem:[%s1860_s0 + $0x94] ss:$24 sps:$4 sm:$0xff]   ;;  %v164_v53 = vld [vmem:[%s1859_s1 + $0x4c0] sm:$0xff] }
  0x38   :  { %v1018_v44 = vld [vmem:[%s1860_s0 + $0x9c] ss:$24 sps:$4 sm:$0xff]   ;;  %v255_v46 = vpack.c.bf16 %v163_v42, %v161_v41  ;;  %v165_v49 = vld [vmem:[%s1859_s1 + $0x4c8] sm:$0xff]  ;;  %v1021_v58 = vld [vmem:[%s1860_s0 + $0x98] ss:$24 sps:$4 sm:$0xff]  }
  0x39   :  { %558 = vmatpush1.bf16.msra.mxu1 %v206_v45  ;;  %v252_v45 = vpack.c.bf16 %v158_v39, %v156_v37  ;;  %v166_v54 = vld [vmem:[%s1859_s1 + $0x4d0] sm:$0xff]  ;;  %v169_v56 = vld [vmem:[%s1859_s1 + $0x4e8] sm:$0xff]  ;;  %v168_v63 = vld [vmem:[%s1859_s1 + $0x4e0] sm:$0xff] }
  0x3a   :  { %661 = vmatpush1.bf16.msra.mxu0 %v238_v47  ;;  %559 = vmatprep.subr.bf16.mxu1 %v209_v48  ;;  %v160_v47 = vld [vmem:[%s1859_s1 + $0x4a0] sm:$0xff]  ;;  %v162_v48 = vld [vmem:[%s1859_s1 + $0x4b0] sm:$0xff]  ;;  %v256_v61 = vpack.c.bf16 %v166_v54, %v164_v53  ;;  %v173_v1 = vld [vmem:[%s1859_s1 + $0x508] sm:$0xff] }
  0x3b   :  { %662 = vmatprep.subr.bf16.mxu0 %v241_v50  ;;  %v167_v50 = vld [vmem:[%s1859_s1 + $0x4d8] sm:$0xff]  ;;  %v254_v51 = vpack.c.bf16 %v162_v48, %v160_v47  ;;  %v170_v0 = vld [vmem:[%s1859_s1 + $0x4f0] sm:$0xff]  ;;  %v172_v5 = vld [vmem:[%s1859_s1 + $0x500] sm:$0xff] }
  0x3c   :  { %v257_v52 = vpack.c.bf16 %v167_v50, %v165_v49  ;;  %v174_v6 = vld [vmem:[%s1859_s1 + $0x510] sm:$0xff]  ;;  %v177_v8 = vld [vmem:[%s1859_s1 + $0x528] sm:$0xff]  ;;  %v179_v9 = vld [vmem:[%s1859_s1 + $0x538] sm:$0xff] }
  0x3d   :  { %560 = vmatpush1.bf16.msra.mxu1 %v208_v57  ;;  %v171_v57 = vld [vmem:[%s1859_s1 + $0x4f8] sm:$0xff]  ;;  %v263_v14 = vpack.c.bf16 %v179_v9, %v177_v8  ;;  %v178_v16 = vld [vmem:[%s1859_s1 + $0x530] sm:$0xff]  ;;  %v1036_v21 = vld [vmem:[%s1860_s0 + $0x12c] ss:$24 sps:$4 sm:$0xff]  }
  0x3e   :  { %663 = vmatpush1.bf16.msra.mxu0 %v240_v59  ;;  %561 = vmatprep.subr.bf16.mxu1 %v211_v60  ;;  %v1022_v59 = vld [vmem:[%s1860_s0 + $0xc4] ss:$24 sps:$4 sm:$0xff]   ;;  %v1032_v18 = vld [vmem:[%s1860_s0 + $0xf0] ss:$24 sps:$4 sm:$0xff]   ;;  %v1045_v24 = vld [vmem:[%s1860_s0 + $0xd4] ss:$24 sps:$4 sm:$0xff]  }
  0x3f   :  { %664 = vmatprep.subr.bf16.mxu0 %v243_v62  ;;  %v1024_v60 = vld [vmem:[%s1860_s0 + $0xcc] ss:$24 sps:$4 sm:$0xff]   ;;  %v259_v62 = vpack.c.bf16 %v171_v57, %v169_v56  ;;  %v1039_v23 = vld [vmem:[%s1860_s0 + $0x128] ss:$24 sps:$4 sm:$0xff]  }
  0x40   :  { %v1042_v25 = vld [vmem:[%s1860_s0 + $0x14] ss:$24 sps:$4 sm:$0xff]   ;;  %v1050_v31 = vld [vmem:[%s1860_s0 + $0x40] ss:$24 sps:$4 sm:$0xff]   ;;  %v1057_v34 = vld [vmem:[%s1860_s0 + $0x130] ss:$24 sps:$4 sm:$0xff]  }
  0x41   :  { %562 = vmatpush1.bf16.msra.mxu1 %v210_v2  ;;  %v175_v2 = vld [vmem:[%s1859_s1 + $0x518] sm:$0xff]  ;;  %v1054_v32 = vld [vmem:[%s1860_s0 + $0x134] ss:$24 sps:$4 sm:$0xff]  }
  0x42   :  { %665 = vmatpush1.bf16.msra.mxu0 %v242_v3  ;;  %922 = vmatprep.subr.bf16.mxu1 %v245_v4  ;;  %v258_v3 = vpack.c.bf16 %v170_v0, %v168_v63  ;;  %v1052_v33 = vld [vmem:[%s1860_s0 + $0x74] ss:$24 sps:$4 sm:$0xff]   ;;  %v1060_v37 = vld [vmem:[%s1860_s0 + $0xa0] ss:$24 sps:$4 sm:$0xff]  }
  0x43   :  { %737 = vmatprep.subr.bf16.mxu0 %v245_v4  ;;  %v261_v4 = vpack.c.bf16 %v175_v2, %v173_v1 }
  0x44   :  { %564 = vmatmul.mubr.bf16.vlgmr.msra.gmra.mrb[0].mxu1 %v998_v7  ;;  %v1026_v7 = vld [vmem:[%s1860_s0 + $0xc0] ss:$24 sps:$4 sm:$0xff]  }
  0x45   :  { %667 = vmatmul.mubr.bf16.vlgmr.msra.gmra.mrb[0].mxu0 %v1001_v10  ;;  %573 = vmatprep.mubr.bf16.mxu1 %v1004_v11  ;;  %v1027_v10 = vld [vmem:[%s1860_s0 + $0xc8] ss:$24 sps:$4 sm:$0xff]   ;;  %v1028_v11 = vld [vmem:[%s1860_s0 + $0xf4] ss:$24 sps:$4 sm:$0xff]  }
  0x46   :  { %738 = vmatpush1.bf16.msra.mxu0 %v244_v13  ;;  %676 = vmatprep.mubr.bf16.mxu0 %v1006_v12  ;;  %v1030_v12 = vld [vmem:[%s1860_s0 + $0xfc] ss:$24 sps:$4 sm:$0xff]  }
  0x47   :  { %739 = vmatprep.subr.bf16.mxu0 %v247_v15  ;;  %932 = vmatpush1.bf16.msra.mxu1 %v244_v13  ;;  %v260_v13 = vpack.c.bf16 %v174_v6, %v172_v5 }
  0x48   :  { %923 = vmatprep.subr.bf16.mxu1 %v247_v15  ;;  %v176_v15 = vld [vmem:[%s1859_s1 + $0x520] sm:$0xff] }
  0x49   :  { %v262_v17 = vpack.c.bf16 %v178_v16, %v176_v15 }
  0x4a   :  { %740 = vmatpush1.bf16.msra.mxu0 %v246_v19 }
  0x4b   :  { %741 = vmatprep.subr.bf16.mxu0 %v249_v22  ;;  %933 = vmatpush1.bf16.msra.mxu1 %v246_v19  ;;  %v1033_v19 = vld [vmem:[%s1860_s0 + $0xf8] ss:$24 sps:$4 sm:$0xff]  }
  0x4c   :  { %574 = vmatmul.mubr.bf16.gmra.mrb[4].mxu1 %v1008_v20  ;;  %924 = vmatprep.subr.bf16.mxu1 %v249_v22  ;;  %v1034_v20 = vld [vmem:[%s1860_s0 + $0x124] ss:$24 sps:$4 sm:$0xff]   ;;  %v1038_v22 = vld [vmem:[%s1860_s0 + $0x120] ss:$24 sps:$4 sm:$0xff]  }
  0x4d   :  { %677 = vmatmul.mubr.bf16.gmra.mrb[4].mxu0 %v1009_v26  ;;  %583 = vmatprep.mubr.bf16.mxu1 %v1010_v27  ;;  %v1043_v26 = vld [vmem:[%s1860_s0 + $0xd0] ss:$24 sps:$4 sm:$0xff]  }
  0x4e   :  { %742 = vmatpush1.bf16.msra.mxu0 %v248_v28  ;;  %686 = vmatprep.mubr.bf16.mxu0 %v1012_v29  ;;  %v1040_v27 = vld [vmem:[%s1860_s0 + $0x10] ss:$24 sps:$4 sm:$0xff]   ;;  %v1046_v29 = vld [vmem:[%s1860_s0 + $0x44] ss:$24 sps:$4 sm:$0xff]  }
  0x4f   :  { %743 = vmatprep.subr.bf16.mxu0 %v251_v30  ;;  %934 = vmatpush1.bf16.msra.mxu1 %v248_v28  ;;  %v1048_v28 = vld [vmem:[%s1860_s0 + $0x104] ss:$24 sps:$4 sm:$0xff]  }
  0x50   :  { %925 = vmatprep.subr.bf16.mxu1 %v251_v30  ;;  %v1051_v30 = vld [vmem:[%s1860_s0 + $0x100] ss:$24 sps:$4 sm:$0xff]  }
  0x52   :  { %744 = vmatpush1.bf16.msra.mxu0 %v250_v36 }
  0x53   :  { %745 = vmatprep.subr.bf16.mxu0 %v253_v38  ;;  %935 = vmatpush1.bf16.msra.mxu1 %v250_v36  ;;  %v1058_v36 = vld [vmem:[%s1860_s0 + $0xa4] ss:$24 sps:$4 sm:$0xff]  }
  0x54   :  { %584 = vmatmul.mubr.bf16.gmra.mrb[8].mxu1 %v1014_v35  ;;  %926 = vmatprep.subr.bf16.mxu1 %v253_v38  ;;  %v1056_v35 = vld [vmem:[%s1860_s0 + $0x70] ss:$24 sps:$4 sm:$0xff]  }
  0x55   :  { %687 = vmatmul.mubr.bf16.gmra.mrb[8].mxu0 %v1015_v40  ;;  %593 = vmatprep.mubr.bf16.mxu1 %v1016_v43 }
  0x56   :  { %696 = vmatprep.mubr.bf16.mxu0 %v1018_v44  ;;  %746 = vmatpush1.bf16.msra.mxu0 %v252_v45 }
  0x57   :  { %747 = vmatprep.subr.bf16.mxu0 %v255_v46  ;;  %936 = vmatpush1.bf16.msra.mxu1 %v252_v45 }
  0x58   :  { %927 = vmatprep.subr.bf16.mxu1 %v255_v46 }
  0x5a   :  { %748 = vmatpush1.bf16.msra.mxu0 %v254_v51 }
  0x5b   :  { %749 = vmatprep.subr.bf16.mxu0 %v257_v52  ;;  %937 = vmatpush1.bf16.msra.mxu1 %v254_v51 }
  0x5c   :  { %594 = vmatmul.mubr.bf16.gmra.mrb[12].mxu1 %v1020_v55  ;;  %928 = vmatprep.subr.bf16.mxu1 %v257_v52 }
  0x5d   :  { %697 = vmatmul.mubr.bf16.gmra.mrb[12].mxu0 %v1021_v58  ;;  %603 = vmatprep.mubr.bf16.mxu1 %v1022_v59 }
  0x5e   :  { %706 = vmatprep.mubr.bf16.mxu0 %v1024_v60  ;;  %750 = vmatpush1.bf16.msra.mxu0 %v256_v61 }
  0x5f   :  { %751 = vmatprep.subr.bf16.mxu0 %v259_v62  ;;  %938 = vmatpush1.bf16.msra.mxu1 %v256_v61 }
  0x60   :  { %929 = vmatprep.subr.bf16.mxu1 %v259_v62 }
  0x62   :  { %752 = vmatpush1.bf16.msra.mxu0 %v258_v3 }
  0x63   :  { %939 = vmatpush1.bf16.msra.mxu1 %v258_v3  ;;  %753 = vmatprep.subr.bf16.mxu0 %v261_v4 }
  0x64   :  { %604 = vmatmul.mubr.bf16.gmra.mrb[16].mxu1 %v1026_v7  ;;  %930 = vmatprep.subr.bf16.mxu1 %v261_v4 }
  0x65   :  { %707 = vmatmul.mubr.bf16.gmra.mrb[16].mxu0 %v1027_v10  ;;  %613 = vmatprep.mubr.bf16.mxu1 %v1028_v11 }
  0x66   :  { %716 = vmatprep.mubr.bf16.mxu0 %v1030_v12  ;;  %754 = vmatpush1.bf16.msra.mxu0 %v260_v13 }
  0x67   :  { %940 = vmatpush1.bf16.msra.mxu1 %v260_v13  ;;  %755 = vmatprep.subr.bf16.mxu0 %v263_v14 }
  0x68   :  { %931 = vmatprep.subr.bf16.mxu1 %v263_v14 }
  0x6a   :  { %756 = vmatpush1.bf16.msra.mxu0 %v262_v17 }
  0x6b   :  { %941 = vmatpush1.bf16.msra.mxu1 %v262_v17 }
  0x6c   :  { %614 = vmatmul.mubr.bf16.gmra.mrb[20].mxu1 %v1032_v18 }
  0x6d   :  { %717 = vmatmul.mubr.bf16.gmra.mrb[20].mxu0 %v1033_v19  ;;  %623 = vmatprep.mubr.bf16.mxu1 %v1034_v20 }
  0x6e   :  { %726 = vmatprep.mubr.bf16.mxu0 %v1036_v21 }
  0x74   :  { %624 = vmatmul.mubr.bf16.gmra.mrb[24].mxu1 %v1038_v22 }
  0x75   :  { %727 = vmatmul.mubr.bf16.gmra.mrb[24].mxu0 %v1039_v23  ;;  %919 = vmatprep.mubr.msk.bf16.mxu1 %vm509_vm0, %v1045_v24 }
  0x76   :  { %915 = vmatprep.mubr.msk.bf16.mxu0 %vm509_vm0, %v1042_v25 }
  0x7c   :  { %810 = vmatmul.mubr.bf16.vlgmr.msra.gmra.mrb[28].mxu1 %v1043_v26 }
  0x7d   :  { %770 = vmatmul.mubr.bf16.vlgmr.msra.gmra.mrb[0].mxu0 %v1040_v27  ;;  %920 = vmatprep.mubr.msk.bf16.mxu1 %vm509_vm0, %v1048_v28 }
  0x7e   :  { %916 = vmatprep.mubr.msk.bf16.mxu0 %vm509_vm0, %v1046_v29 }
  0x84   :  { %820 = vmatmul.mubr.bf16.gmra.mrb[32].mxu1 %v1051_v30 }
  0x85   :  { %780 = vmatmul.mubr.bf16.gmra.mrb[4].mxu0 %v1050_v31  ;;  %921 = vmatprep.mubr.msk.bf16.mxu1 %vm509_vm0, %v1054_v32 }
  0x86   :  { %917 = vmatprep.mubr.msk.bf16.mxu0 %vm509_vm0, %v1052_v33 }
  0x8c   :  { %830 = vmatmul.mubr.bf16.gmra.mrb[36].mxu1 %v1057_v34 }
  0x8d   :  { %790 = vmatmul.mubr.bf16.gmra.mrb[8].mxu0 %v1056_v35 }
  0x8e   :  { %918 = vmatprep.mubr.msk.bf16.mxu0 %vm509_vm0, %v1058_v36 }
  0x95   :  { %800 = vmatmul.mubr.bf16.gmra.mrb[12].mxu0 %v1060_v37 }
 0x117   :  { %v565_v38 = vpop.f32.mrb[0].mxu1 }
 0x118   :  { %v567_v39 = vpop.f32.mrb[1].mxu1 }
 0x119   :  { %v1713_v40 = vpop.f32.mrb[2].mxu1 }
 0x11a   :  { %v1715_v41 = vpop.f32.mrb[3].mxu1 }
 0x11f   :  { %v1717_v42 = vpop.f32.mrb[4].mxu1 }
 0x120   :  { %v1719_v43 = vpop.f32.mrb[5].mxu1 }
 0x121   :  { %v1721_v44 = vpop.f32.mrb[6].mxu1 }
 0x122   :  { %v1723_v45 = vpop.f32.mrb[7].mxu1 }
 0x127   :  { %v1725_v46 = vpop.f32.mrb[8].mxu1 }
 0x128   :  { %v1727_v47 = vpop.f32.mrb[9].mxu1 }
 0x129   :  { %v1729_v48 = vpop.f32.mrb[10].mxu1 }
 0x12a   :  { %v1731_v49 = vpop.f32.mrb[11].mxu1 }
 0x12f   :  { %v1733_v50 = vpop.f32.mrb[12].mxu1 }
 0x130   :  { %v1735_v51 = vpop.f32.mrb[13].mxu1 }
 0x131   :  { %v1737_v52 = vpop.f32.mrb[14].mxu1 }
 0x132   :  { %v1739_v53 = vpop.f32.mrb[15].mxu1 }
 0x137   :  { %v605_v54 = vpop.f32.mrb[16].mxu1 }
 0x138   :  { %v708_v55 = vpop.f32.mrb[16].mxu0  ;;  %v607_v56 = vpop.f32.mrb[17].mxu1 }
 0x139   :  { %v709_v57 = vadd.f32 %v708_v55, %v605_v54  ;;  %v710_v58 = vpop.f32.mrb[17].mxu0  ;;  %v609_v59 = vpop.f32.mrb[18].mxu1 }
 0x13a   :  { %v711_v60 = vadd.f32 %v710_v58, %v607_v56  ;;  %v712_v61 = vpop.f32.mrb[18].mxu0  ;;  %v611_v62 = vpop.f32.mrb[19].mxu1 }
 0x13b   :  { %v713_v63 = vadd.f32 %v712_v61, %v609_v59  ;;  %v714_v0 = vpop.f32.mrb[19].mxu0 }
 0x13c   :  { %v715_v1 = vadd.f32 %v714_v0, %v611_v62 }
 0x13f   :  { %v615_v2 = vpop.f32.mrb[20].mxu1 }
 0x140   :  { %v718_v3 = vpop.f32.mrb[20].mxu0  ;;  %v617_v4 = vpop.f32.mrb[21].mxu1 }
 0x141   :  { %v719_v5 = vadd.f32 %v718_v3, %v615_v2  ;;  %v720_v6 = vpop.f32.mrb[21].mxu0  ;;  %v619_v7 = vpop.f32.mrb[22].mxu1 }
 0x142   :  { %v721_v8 = vadd.f32 %v720_v6, %v617_v4  ;;  %v722_v9 = vpop.f32.mrb[22].mxu0  ;;  %v621_v10 = vpop.f32.mrb[23].mxu1 }
 0x143   :  { %v723_v11 = vadd.f32 %v722_v9, %v619_v7  ;;  %v724_v12 = vpop.f32.mrb[23].mxu0 }
 0x144   :  { %v725_v13 = vadd.f32 %v724_v12, %v621_v10 }
 0x147   :  { %v625_v14 = vpop.f32.mrb[24].mxu1 }
 0x148   :  { %v728_v15 = vpop.f32.mrb[24].mxu0  ;;  %v627_v16 = vpop.f32.mrb[25].mxu1 }
 0x149   :  { %v729_v17 = vadd.f32 %v728_v15, %v625_v14  ;;  %v730_v18 = vpop.f32.mrb[25].mxu0  ;;  %v629_v19 = vpop.f32.mrb[26].mxu1 }
 0x14a   :  { %v731_v20 = vadd.f32 %v730_v18, %v627_v16  ;;  %v732_v21 = vpop.f32.mrb[26].mxu0  ;;  %v631_v22 = vpop.f32.mrb[27].mxu1 }
 0x14b   :  { %v1741_v23 = vadd.f32 %v732_v21, %v629_v19  ;;  %v734_v24 = vpop.f32.mrb[27].mxu0 }
 0x14c   :  { %v1743_v25 = vadd.f32 %v734_v24, %v631_v22 }
 0x14f   :  { %v811_v26 = vpop.f32.mrb[28].mxu1 }
 0x150   :  { %v771_v27 = vpop.f32.mrb[0].mxu0  ;;  %v812_v28 = vadd.f32 %v811_v26, %v709_v57  ;;  %v813_v29 = vpop.f32.mrb[29].mxu1 }
 0x151   :  { %v942_v30 = vadd.f32 %v771_v27, %v565_v38  ;;  %v773_v31 = vpop.f32.mrb[1].mxu0  ;;  %v814_v32 = vadd.f32 %v813_v29, %v711_v60  ;;  %v815_v33 = vpop.f32.mrb[30].mxu1 }
 0x152   :  { %857 = vst [vmem:[%s1861_s2 + $0x80] sm:$0xff] %v812_v28  ;;  %v943_v34 = vadd.f32 %v773_v31, %v567_v39  ;;  %v775_v35 = vpop.f32.mrb[2].mxu0  ;;  %v816_v36 = vadd.f32 %v815_v33, %v713_v63  ;;  %v817_v37 = vpop.f32.mrb[31].mxu1 }
 0x153   :  { %840 = vst [vmem:[%s1861_s2] sm:$0xff] %v942_v30  ;;  %858 = vst.msk [vmem:[%s1861_s2 + $0x88] sm:$0xff] %vm841_vm1, %v814_v32  ;;  %v944_v38 = vadd.f32 %v775_v35, %v1713_v40  ;;  %v777_v54 = vpop.f32.mrb[3].mxu0  ;;  %v818_v55 = vadd.f32 %v817_v37, %v715_v1 }
 0x154   :  { %842 = vst.msk [vmem:[%s1861_s2 + $0x8] sm:$0xff] %vm841_vm1, %v943_v34  ;;  %859 = vst [vmem:[%s1861_s2 + $0x90] sm:$0xff] %v816_v36  ;;  %v945_v39 = vadd.f32 %v777_v54, %v1715_v41 }
 0x155   :  { %843 = vst [vmem:[%s1861_s2 + $0x10] sm:$0xff] %v944_v38  ;;  %860 = vst.msk [vmem:[%s1861_s2 + $0x98] sm:$0xff] %vm841_vm1, %v818_v55 }
 0x156   :  { %844 = vst.msk [vmem:[%s1861_s2 + $0x18] sm:$0xff] %vm841_vm1, %v945_v39 }
 0x157   :  { %v821_v40 = vpop.f32.mrb[32].mxu1 }
 0x158   :  { %v781_v56 = vpop.f32.mrb[4].mxu0  ;;  %v822_v57 = vadd.f32 %v821_v40, %v719_v5  ;;  %v823_v58 = vpop.f32.mrb[33].mxu1 }
 0x159   :  { %v946_v41 = vadd.f32 %v781_v56, %v1717_v42  ;;  %v783_v59 = vpop.f32.mrb[5].mxu0  ;;  %v824_v60 = vadd.f32 %v823_v58, %v721_v8  ;;  %v825_v61 = vpop.f32.mrb[34].mxu1 }
 0x15a   :  { %861 = vst [vmem:[%s1861_s2 + $0xa0] sm:$0xff] %v822_v57  ;;  %v947_v62 = vadd.f32 %v783_v59, %v1719_v43  ;;  %v785_v63 = vpop.f32.mrb[6].mxu0  ;;  %v826_v0 = vadd.f32 %v825_v61, %v723_v11  ;;  %v827_v1 = vpop.f32.mrb[35].mxu1 }
 0x15b   :  { %845 = vst [vmem:[%s1861_s2 + $0x20] sm:$0xff] %v946_v41  ;;  %862 = vst.msk [vmem:[%s1861_s2 + $0xa8] sm:$0xff] %vm841_vm1, %v824_v60  ;;  %v948_v42 = vadd.f32 %v785_v63, %v1721_v44  ;;  %v787_v2 = vpop.f32.mrb[7].mxu0  ;;  %v828_v3 = vadd.f32 %v827_v1, %v725_v13 }
 0x15c   :  { %846 = vst.msk [vmem:[%s1861_s2 + $0x28] sm:$0xff] %vm841_vm1, %v947_v62  ;;  %863 = vst [vmem:[%s1861_s2 + $0xb0] sm:$0xff] %v826_v0  ;;  %v949_v43 = vadd.f32 %v787_v2, %v1723_v45 }
 0x15d   :  { %847 = vst [vmem:[%s1861_s2 + $0x30] sm:$0xff] %v948_v42  ;;  %864 = vst.msk [vmem:[%s1861_s2 + $0xb8] sm:$0xff] %vm841_vm1, %v828_v3 }
 0x15e   :  { %848 = vst.msk [vmem:[%s1861_s2 + $0x38] sm:$0xff] %vm841_vm1, %v949_v43 }
 0x15f   :  { %v831_v44 = vpop.f32.mrb[36].mxu1 }
 0x160   :  { %v791_v4 = vpop.f32.mrb[8].mxu0  ;;  %v832_v5 = vadd.f32 %v831_v44, %v729_v17  ;;  %v833_v6 = vpop.f32.mrb[37].mxu1 }
 0x161   :  { %v950_v45 = vadd.f32 %v791_v4, %v1725_v46  ;;  %v793_v7 = vpop.f32.mrb[9].mxu0  ;;  %v834_v8 = vadd.f32 %v833_v6, %v731_v20  ;;  %v835_v9 = vpop.f32.mrb[38].mxu1 }
 0x162   :  { %865 = vst [vmem:[%s1861_s2 + $0xc0] sm:$0xff] %v832_v5  ;;  %v951_v10 = vadd.f32 %v793_v7, %v1727_v47  ;;  %v795_v11 = vpop.f32.mrb[10].mxu0  ;;  %v836_v12 = vadd.f32 %v835_v9, %v1741_v23  ;;  %v837_v13 = vpop.f32.mrb[39].mxu1 }
 0x163   :  { %849 = vst [vmem:[%s1861_s2 + $0x40] sm:$0xff] %v950_v45  ;;  %866 = vst.msk [vmem:[%s1861_s2 + $0xc8] sm:$0xff] %vm841_vm1, %v834_v8  ;;  %v952_v46 = vadd.f32 %v795_v11, %v1729_v48  ;;  %v797_v14 = vpop.f32.mrb[11].mxu0  ;;  %v838_v15 = vadd.f32 %v837_v13, %v1743_v25 }
 0x164   :  { %850 = vst.msk [vmem:[%s1861_s2 + $0x48] sm:$0xff] %vm841_vm1, %v951_v10  ;;  %867 = vst [vmem:[%s1861_s2 + $0xd0] sm:$0xff] %v836_v12  ;;  %v953_v47 = vadd.f32 %v797_v14, %v1731_v49 }
 0x165   :  { %851 = vst [vmem:[%s1861_s2 + $0x50] sm:$0xff] %v952_v46  ;;  %868 = vst.msk [vmem:[%s1861_s2 + $0xd8] sm:$0xff] %vm841_vm1, %v838_v15 }
 0x166   :  { %852 = vst.msk [vmem:[%s1861_s2 + $0x58] sm:$0xff] %vm841_vm1, %v953_v47 }
 0x168   :  { %v801_v48 = vpop.f32.mrb[12].mxu0 }
 0x169   :  { %v954_v16 = vadd.f32 %v801_v48, %v1733_v50  ;;  %v803_v17 = vpop.f32.mrb[13].mxu0 }
 0x16a   :  { %v955_v49 = vadd.f32 %v803_v17, %v1735_v51  ;;  %v805_v18 = vpop.f32.mrb[14].mxu0 }
 0x16b   :  { %853 = vst [vmem:[%s1861_s2 + $0x60] sm:$0xff] %v954_v16  ;;  %v956_v19 = vadd.f32 %v805_v18, %v1737_v52  ;;  %v807_v20 = vpop.f32.mrb[15].mxu0 }
 0x16c   :  { %854 = vst.msk [vmem:[%s1861_s2 + $0x68] sm:$0xff] %vm841_vm1, %v955_v49  ;;  %v957_v21 = vadd.f32 %v807_v20, %v1739_v53 }
 0x16d   :  { %855 = vst [vmem:[%s1861_s2 + $0x70] sm:$0xff] %v956_v19 }
 0x16e   :  { %856 = vst.msk [vmem:[%s1861_s2 + $0x78] sm:$0xff] %vm841_vm1, %v957_v21 }

</bundles_post_ra>
